<compile_context>
chip_gen: v5e
topology: v5e:2x2
jax: 0.10.0
libtpu: 0.0.40
codegen_flags: <defaults>
</compile_context>

<pallas_src>
import functools

import jax
import jax.numpy as jnp
from jax.experimental import pallas as pl
from jax.experimental.pallas import tpu as pltpu

IN_F, H1, H2, OUT_F = 8, 6, 4, 1


def _sigmoid(z):
    # sigmoid(x) == 0.5 * tanh(0.5 * x) + 0.5  -> single EUP op instead of
    # exp + reciprocal (EUP has exactly one VLIW slot).
    return 0.5 * jnp.tanh(0.5 * z) + 0.5


def mlp_kernel(w1_ref, b1_ref, w2_ref, b2_ref, w3_ref, b3_ref, x_ref, o_ref):
    # x_ref: [IN_F, TB] VMEM tile, batch on the lane axis.
    # w*/b* refs: tiny parameter tables resident in SMEM for the whole grid.
    x_rows = [x_ref[pl.ds(k, 1), :] for k in range(IN_F)]  # IN_F x [1, TB]

    def dense(w_ref, b_ref, rows, n_out, n_in):
        # Unrolled scalar-broadcast FMAs over the TB-wide lane vectors (VPU).
        outs = []
        for j in range(n_out):
            acc = rows[0] * w_ref[j, 0]
            for k in range(1, n_in):
                acc = acc + rows[k] * w_ref[j, k]
            outs.append(_sigmoid(acc + b_ref[j]))
        return outs

    h1 = dense(w1_ref, b1_ref, x_rows, H1, IN_F)   # 6 x [1, TB]
    h2 = dense(w2_ref, b2_ref, h1, H2, H1)         # 4 x [1, TB]
    out = dense(w3_ref, b3_ref, h2, OUT_F, H2)     # 1 x [1, TB]
    o_ref[...] = out[0].astype(o_ref.dtype)        # lane-dense [1, TB] store


def _round_up(n, m):
    return (n + m - 1) // m * m


@functools.partial(jax.jit, static_argnames=("tb_max",))
def mlp_forward(x, params, *, tb_max=4096):
    """x: [B, 8] f32; params: PyTorch-style Linear weights (out,in), biases (out,)."""
    B = x.shape[0]
    # Batch tile: lane-dense (multiple of 128), capped so the per-step VMEM
    # footprint stays tiny even on v7x (64 MiB VMEM) while being big enough to
    # amortize per-step overhead for large batches.
    tb = min(tb_max, _round_up(B, 128))
    padded_b = _round_up(B, tb)
    grid = (padded_b // tb,)

    # Flip layout: [B, 8] -> [8, padded_B]; no per-call weight transposes needed
    # since h = W @ x uses the PyTorch (out, in) layout directly.
    xt = jnp.zeros((IN_F, padded_b), x.dtype).at[:, :B].set(x.T)

    smem = pl.BlockSpec(memory_space=pltpu.MemorySpace.SMEM)

    out = pl.pallas_call(
        mlp_kernel,
        out_shape=jax.ShapeDtypeStruct((OUT_F, padded_b), x.dtype),
        grid=grid,
        in_specs=[smem, smem, smem, smem, smem, smem,
                  pl.BlockSpec((IN_F, tb), lambda i: (0, i))],
        out_specs=pl.BlockSpec((OUT_F, tb), lambda i: (0, i)),
        compiler_params=pltpu.CompilerParams(
            dimension_semantics=("parallel",)),
    )(params["w1"], params["b1"], params["w2"], params["b2"],
      params["w3"], params["b3"], xt)

    return out[0, :B][:, None]  # back to [B, 1]


def init_params(key):
    """Deterministic init matching nn.Linear shapes (out_features, in_features)."""
    ks = jax.random.split(key, 6)

    def uniform(k, shape, fan_in):
        bound = 1.0 / jnp.sqrt(fan_in)
        return jax.random.uniform(k, shape, jnp.float32, -bound, bound)

    return {
        "w1": uniform(ks[0], (H1, IN_F), IN_F), "b1": uniform(ks[1], (H1,), IN_F),
        "w2": uniform(ks[2], (H2, H1), H1),     "b2": uniform(ks[3], (H2,), H1),
        "w3": uniform(ks[4], (OUT_F, H2), H2),  "b3": uniform(ks[5], (OUT_F,), H2),
    }


if __name__ == "__main__":
    key = jax.random.PRNGKey(0)
    k_x, k_p = jax.random.split(key)

    batch = 8
    x = jax.random.normal(k_x, (batch, IN_F), jnp.float32)
    params = init_params(k_p)

    out = jax.block_until_ready(mlp_forward(x, params))

    # Plain-JAX reference (same math as the PyTorch module).
    ref = x
    for w, b in ((params["w1"], params["b1"]),
                 (params["w2"], params["b2"]),
                 (params["w3"], params["b3"])):
        ref = jax.nn.sigmoid(ref @ w.T + b)
    assert out.shape == (batch, 1)
    assert jnp.allclose(out, ref, atol=1e-5), "mismatch vs reference"

    print("KERNEL_OK")
</pallas_src>

<mosaic_0001>
module attributes {stable_mosaic.version = 11 : i64} {
  func.func @mlp_kernel(%arg0: i32, %arg1: memref<6x8xf32, #tpu.memory_space<smem>>, %arg2: memref<6xf32, #tpu.memory_space<smem>>, %arg3: memref<4x6xf32, #tpu.memory_space<smem>>, %arg4: memref<4xf32, #tpu.memory_space<smem>>, %arg5: memref<1x4xf32, #tpu.memory_space<smem>>, %arg6: memref<1xf32, #tpu.memory_space<smem>>, %arg7: memref<8x128xf32, #tpu.memory_space<vmem>>, %arg8: memref<1x128xf32, #tpu.memory_space<vmem>>) attributes {dimension_semantics = [#tpu.dimension_semantics<parallel>], iteration_bounds = array<i64: 1>, scalar_prefetch = 0 : i64, scratch_operands = 0 : i64, tpu.core_type = #tpu.core_type<tc>, window_params = [{transform_indices = @transform_0, window_bounds = array<i64: 6, 8>}, {transform_indices = @transform_1, window_bounds = array<i64: 6>}, {transform_indices = @transform_2, window_bounds = array<i64: 4, 6>}, {transform_indices = @transform_3, window_bounds = array<i64: 4>}, {transform_indices = @transform_4, window_bounds = array<i64: 1, 4>}, {transform_indices = @transform_5, window_bounds = array<i64: 1>}, {transform_indices = @transform_6, window_bounds = array<i64: 8, 128>}, {transform_indices = @transform_7, window_bounds = array<i64: 1, 128>}]} {
    %c0 = arith.constant 0 : index
    %c0_0 = arith.constant 0 : index
    %0 = vector.load %arg7[%c0, %c0_0] : memref<8x128xf32, #tpu.memory_space<vmem>>, vector<1x128xf32>
    %c1 = arith.constant 1 : index
    %c0_1 = arith.constant 0 : index
    %1 = vector.load %arg7[%c1, %c0_1] : memref<8x128xf32, #tpu.memory_space<vmem>>, vector<1x128xf32>
    %c2 = arith.constant 2 : index
    %c0_2 = arith.constant 0 : index
    %2 = vector.load %arg7[%c2, %c0_2] : memref<8x128xf32, #tpu.memory_space<vmem>>, vector<1x128xf32>
    %c3 = arith.constant 3 : index
    %c0_3 = arith.constant 0 : index
    %3 = vector.load %arg7[%c3, %c0_3] : memref<8x128xf32, #tpu.memory_space<vmem>>, vector<1x128xf32>
    %c4 = arith.constant 4 : index
    %c0_4 = arith.constant 0 : index
    %4 = vector.load %arg7[%c4, %c0_4] : memref<8x128xf32, #tpu.memory_space<vmem>>, vector<1x128xf32>
    %c5 = arith.constant 5 : index
    %c0_5 = arith.constant 0 : index
    %5 = vector.load %arg7[%c5, %c0_5] : memref<8x128xf32, #tpu.memory_space<vmem>>, vector<1x128xf32>
    %c6 = arith.constant 6 : index
    %c0_6 = arith.constant 0 : index
    %6 = vector.load %arg7[%c6, %c0_6] : memref<8x128xf32, #tpu.memory_space<vmem>>, vector<1x128xf32>
    %c7 = arith.constant 7 : index
    %c0_7 = arith.constant 0 : index
    %7 = vector.load %arg7[%c7, %c0_7] : memref<8x128xf32, #tpu.memory_space<vmem>>, vector<1x128xf32>
    %c0_8 = arith.constant 0 : index
    %c0_9 = arith.constant 0 : index
    %8 = memref.load %arg1[%c0_8, %c0_9] : memref<6x8xf32, #tpu.memory_space<smem>>
    %9 = vector.broadcast %8 : f32 to vector<1x128xf32>
    %10 = arith.mulf %0, %9 : vector<1x128xf32>
    %c0_10 = arith.constant 0 : index
    %c1_11 = arith.constant 1 : index
    %11 = memref.load %arg1[%c0_10, %c1_11] : memref<6x8xf32, #tpu.memory_space<smem>>
    %12 = vector.broadcast %11 : f32 to vector<1x128xf32>
    %13 = arith.mulf %1, %12 : vector<1x128xf32>
    %14 = arith.addf %10, %13 : vector<1x128xf32>
    %c0_12 = arith.constant 0 : index
    %c2_13 = arith.constant 2 : index
    %15 = memref.load %arg1[%c0_12, %c2_13] : memref<6x8xf32, #tpu.memory_space<smem>>
    %16 = vector.broadcast %15 : f32 to vector<1x128xf32>
    %17 = arith.mulf %2, %16 : vector<1x128xf32>
    %18 = arith.addf %14, %17 : vector<1x128xf32>
    %c0_14 = arith.constant 0 : index
    %c3_15 = arith.constant 3 : index
    %19 = memref.load %arg1[%c0_14, %c3_15] : memref<6x8xf32, #tpu.memory_space<smem>>
    %20 = vector.broadcast %19 : f32 to vector<1x128xf32>
    %21 = arith.mulf %3, %20 : vector<1x128xf32>
    %22 = arith.addf %18, %21 : vector<1x128xf32>
    %c0_16 = arith.constant 0 : index
    %c4_17 = arith.constant 4 : index
    %23 = memref.load %arg1[%c0_16, %c4_17] : memref<6x8xf32, #tpu.memory_space<smem>>
    %24 = vector.broadcast %23 : f32 to vector<1x128xf32>
    %25 = arith.mulf %4, %24 : vector<1x128xf32>
    %26 = arith.addf %22, %25 : vector<1x128xf32>
    %c0_18 = arith.constant 0 : index
    %c5_19 = arith.constant 5 : index
    %27 = memref.load %arg1[%c0_18, %c5_19] : memref<6x8xf32, #tpu.memory_space<smem>>
    %28 = vector.broadcast %27 : f32 to vector<1x128xf32>
    %29 = arith.mulf %5, %28 : vector<1x128xf32>
    %30 = arith.addf %26, %29 : vector<1x128xf32>
    %c0_20 = arith.constant 0 : index
    %c6_21 = arith.constant 6 : index
    %31 = memref.load %arg1[%c0_20, %c6_21] : memref<6x8xf32, #tpu.memory_space<smem>>
    %32 = vector.broadcast %31 : f32 to vector<1x128xf32>
    %33 = arith.mulf %6, %32 : vector<1x128xf32>
    %34 = arith.addf %30, %33 : vector<1x128xf32>
    %c0_22 = arith.constant 0 : index
    %c7_23 = arith.constant 7 : index
    %35 = memref.load %arg1[%c0_22, %c7_23] : memref<6x8xf32, #tpu.memory_space<smem>>
    %36 = vector.broadcast %35 : f32 to vector<1x128xf32>
    %37 = arith.mulf %7, %36 : vector<1x128xf32>
    %38 = arith.addf %34, %37 : vector<1x128xf32>
    %c0_24 = arith.constant 0 : index
    %39 = memref.load %arg2[%c0_24] : memref<6xf32, #tpu.memory_space<smem>>
    %40 = vector.broadcast %39 : f32 to vector<1x128xf32>
    %41 = arith.addf %38, %40 : vector<1x128xf32>
    %cst = arith.constant 5.000000e-01 : f32
    %42 = vector.broadcast %cst : f32 to vector<1x128xf32>
    %43 = arith.mulf %42, %41 : vector<1x128xf32>
    %44 = math.tanh %43 : vector<1x128xf32>
    %cst_25 = arith.constant 5.000000e-01 : f32
    %45 = vector.broadcast %cst_25 : f32 to vector<1x128xf32>
    %46 = arith.mulf %45, %44 : vector<1x128xf32>
    %cst_26 = arith.constant 5.000000e-01 : f32
    %47 = vector.broadcast %cst_26 : f32 to vector<1x128xf32>
    %48 = arith.addf %46, %47 : vector<1x128xf32>
    %c1_27 = arith.constant 1 : index
    %c0_28 = arith.constant 0 : index
    %49 = memref.load %arg1[%c1_27, %c0_28] : memref<6x8xf32, #tpu.memory_space<smem>>
    %50 = vector.broadcast %49 : f32 to vector<1x128xf32>
    %51 = arith.mulf %0, %50 : vector<1x128xf32>
    %c1_29 = arith.constant 1 : index
    %c1_30 = arith.constant 1 : index
    %52 = memref.load %arg1[%c1_29, %c1_30] : memref<6x8xf32, #tpu.memory_space<smem>>
    %53 = vector.broadcast %52 : f32 to vector<1x128xf32>
    %54 = arith.mulf %1, %53 : vector<1x128xf32>
    %55 = arith.addf %51, %54 : vector<1x128xf32>
    %c1_31 = arith.constant 1 : index
    %c2_32 = arith.constant 2 : index
    %56 = memref.load %arg1[%c1_31, %c2_32] : memref<6x8xf32, #tpu.memory_space<smem>>
    %57 = vector.broadcast %56 : f32 to vector<1x128xf32>
    %58 = arith.mulf %2, %57 : vector<1x128xf32>
    %59 = arith.addf %55, %58 : vector<1x128xf32>
    %c1_33 = arith.constant 1 : index
    %c3_34 = arith.constant 3 : index
    %60 = memref.load %arg1[%c1_33, %c3_34] : memref<6x8xf32, #tpu.memory_space<smem>>
    %61 = vector.broadcast %60 : f32 to vector<1x128xf32>
    %62 = arith.mulf %3, %61 : vector<1x128xf32>
    %63 = arith.addf %59, %62 : vector<1x128xf32>
    %c1_35 = arith.constant 1 : index
    %c4_36 = arith.constant 4 : index
    %64 = memref.load %arg1[%c1_35, %c4_36] : memref<6x8xf32, #tpu.memory_space<smem>>
    %65 = vector.broadcast %64 : f32 to vector<1x128xf32>
    %66 = arith.mulf %4, %65 : vector<1x128xf32>
    %67 = arith.addf %63, %66 : vector<1x128xf32>
    %c1_37 = arith.constant 1 : index
    %c5_38 = arith.constant 5 : index
    %68 = memref.load %arg1[%c1_37, %c5_38] : memref<6x8xf32, #tpu.memory_space<smem>>
    %69 = vector.broadcast %68 : f32 to vector<1x128xf32>
    %70 = arith.mulf %5, %69 : vector<1x128xf32>
    %71 = arith.addf %67, %70 : vector<1x128xf32>
    %c1_39 = arith.constant 1 : index
    %c6_40 = arith.constant 6 : index
    %72 = memref.load %arg1[%c1_39, %c6_40] : memref<6x8xf32, #tpu.memory_space<smem>>
    %73 = vector.broadcast %72 : f32 to vector<1x128xf32>
    %74 = arith.mulf %6, %73 : vector<1x128xf32>
    %75 = arith.addf %71, %74 : vector<1x128xf32>
    %c1_41 = arith.constant 1 : index
    %c7_42 = arith.constant 7 : index
    %76 = memref.load %arg1[%c1_41, %c7_42] : memref<6x8xf32, #tpu.memory_space<smem>>
    %77 = vector.broadcast %76 : f32 to vector<1x128xf32>
    %78 = arith.mulf %7, %77 : vector<1x128xf32>
    %79 = arith.addf %75, %78 : vector<1x128xf32>
    %c1_43 = arith.constant 1 : index
    %80 = memref.load %arg2[%c1_43] : memref<6xf32, #tpu.memory_space<smem>>
    %81 = vector.broadcast %80 : f32 to vector<1x128xf32>
    %82 = arith.addf %79, %81 : vector<1x128xf32>
    %cst_44 = arith.constant 5.000000e-01 : f32
    %83 = vector.broadcast %cst_44 : f32 to vector<1x128xf32>
    %84 = arith.mulf %83, %82 : vector<1x128xf32>
    %85 = math.tanh %84 : vector<1x128xf32>
    %cst_45 = arith.constant 5.000000e-01 : f32
    %86 = vector.broadcast %cst_45 : f32 to vector<1x128xf32>
    %87 = arith.mulf %86, %85 : vector<1x128xf32>
    %cst_46 = arith.constant 5.000000e-01 : f32
    %88 = vector.broadcast %cst_46 : f32 to vector<1x128xf32>
    %89 = arith.addf %87, %88 : vector<1x128xf32>
    %c2_47 = arith.constant 2 : index
    %c0_48 = arith.constant 0 : index
    %90 = memref.load %arg1[%c2_47, %c0_48] : memref<6x8xf32, #tpu.memory_space<smem>>
    %91 = vector.broadcast %90 : f32 to vector<1x128xf32>
    %92 = arith.mulf %0, %91 : vector<1x128xf32>
    %c2_49 = arith.constant 2 : index
    %c1_50 = arith.constant 1 : index
    %93 = memref.load %arg1[%c2_49, %c1_50] : memref<6x8xf32, #tpu.memory_space<smem>>
    %94 = vector.broadcast %93 : f32 to vector<1x128xf32>
    %95 = arith.mulf %1, %94 : vector<1x128xf32>
    %96 = arith.addf %92, %95 : vector<1x128xf32>
    %c2_51 = arith.constant 2 : index
    %c2_52 = arith.constant 2 : index
    %97 = memref.load %arg1[%c2_51, %c2_52] : memref<6x8xf32, #tpu.memory_space<smem>>
    %98 = vector.broadcast %97 : f32 to vector<1x128xf32>
    %99 = arith.mulf %2, %98 : vector<1x128xf32>
    %100 = arith.addf %96, %99 : vector<1x128xf32>
    %c2_53 = arith.constant 2 : index
    %c3_54 = arith.constant 3 : index
    %101 = memref.load %arg1[%c2_53, %c3_54] : memref<6x8xf32, #tpu.memory_space<smem>>
    %102 = vector.broadcast %101 : f32 to vector<1x128xf32>
    %103 = arith.mulf %3, %102 : vector<1x128xf32>
    %104 = arith.addf %100, %103 : vector<1x128xf32>
    %c2_55 = arith.constant 2 : index
    %c4_56 = arith.constant 4 : index
    %105 = memref.load %arg1[%c2_55, %c4_56] : memref<6x8xf32, #tpu.memory_space<smem>>
    %106 = vector.broadcast %105 : f32 to vector<1x128xf32>
    %107 = arith.mulf %4, %106 : vector<1x128xf32>
    %108 = arith.addf %104, %107 : vector<1x128xf32>
    %c2_57 = arith.constant 2 : index
    %c5_58 = arith.constant 5 : index
    %109 = memref.load %arg1[%c2_57, %c5_58] : memref<6x8xf32, #tpu.memory_space<smem>>
    %110 = vector.broadcast %109 : f32 to vector<1x128xf32>
    %111 = arith.mulf %5, %110 : vector<1x128xf32>
    %112 = arith.addf %108, %111 : vector<1x128xf32>
    %c2_59 = arith.constant 2 : index
    %c6_60 = arith.constant 6 : index
    %113 = memref.load %arg1[%c2_59, %c6_60] : memref<6x8xf32, #tpu.memory_space<smem>>
    %114 = vector.broadcast %113 : f32 to vector<1x128xf32>
    %115 = arith.mulf %6, %114 : vector<1x128xf32>
    %116 = arith.addf %112, %115 : vector<1x128xf32>
    %c2_61 = arith.constant 2 : index
    %c7_62 = arith.constant 7 : index
    %117 = memref.load %arg1[%c2_61, %c7_62] : memref<6x8xf32, #tpu.memory_space<smem>>
    %118 = vector.broadcast %117 : f32 to vector<1x128xf32>
    %119 = arith.mulf %7, %118 : vector<1x128xf32>
    %120 = arith.addf %116, %119 : vector<1x128xf32>
    %c2_63 = arith.constant 2 : index
    %121 = memref.load %arg2[%c2_63] : memref<6xf32, #tpu.memory_space<smem>>
    %122 = vector.broadcast %121 : f32 to vector<1x128xf32>
    %123 = arith.addf %120, %122 : vector<1x128xf32>
    %cst_64 = arith.constant 5.000000e-01 : f32
    %124 = vector.broadcast %cst_64 : f32 to vector<1x128xf32>
    %125 = arith.mulf %124, %123 : vector<1x128xf32>
    %126 = math.tanh %125 : vector<1x128xf32>
    %cst_65 = arith.constant 5.000000e-01 : f32
    %127 = vector.broadcast %cst_65 : f32 to vector<1x128xf32>
    %128 = arith.mulf %127, %126 : vector<1x128xf32>
    %cst_66 = arith.constant 5.000000e-01 : f32
    %129 = vector.broadcast %cst_66 : f32 to vector<1x128xf32>
    %130 = arith.addf %128, %129 : vector<1x128xf32>
    %c3_67 = arith.constant 3 : index
    %c0_68 = arith.constant 0 : index
    %131 = memref.load %arg1[%c3_67, %c0_68] : memref<6x8xf32, #tpu.memory_space<smem>>
    %132 = vector.broadcast %131 : f32 to vector<1x128xf32>
    %133 = arith.mulf %0, %132 : vector<1x128xf32>
    %c3_69 = arith.constant 3 : index
    %c1_70 = arith.constant 1 : index
    %134 = memref.load %arg1[%c3_69, %c1_70] : memref<6x8xf32, #tpu.memory_space<smem>>
    %135 = vector.broadcast %134 : f32 to vector<1x128xf32>
    %136 = arith.mulf %1, %135 : vector<1x128xf32>
    %137 = arith.addf %133, %136 : vector<1x128xf32>
    %c3_71 = arith.constant 3 : index
    %c2_72 = arith.constant 2 : index
    %138 = memref.load %arg1[%c3_71, %c2_72] : memref<6x8xf32, #tpu.memory_space<smem>>
    %139 = vector.broadcast %138 : f32 to vector<1x128xf32>
    %140 = arith.mulf %2, %139 : vector<1x128xf32>
    %141 = arith.addf %137, %140 : vector<1x128xf32>
    %c3_73 = arith.constant 3 : index
    %c3_74 = arith.constant 3 : index
    %142 = memref.load %arg1[%c3_73, %c3_74] : memref<6x8xf32, #tpu.memory_space<smem>>
    %143 = vector.broadcast %142 : f32 to vector<1x128xf32>
    %144 = arith.mulf %3, %143 : vector<1x128xf32>
    %145 = arith.addf %141, %144 : vector<1x128xf32>
    %c3_75 = arith.constant 3 : index
    %c4_76 = arith.constant 4 : index
    %146 = memref.load %arg1[%c3_75, %c4_76] : memref<6x8xf32, #tpu.memory_space<smem>>
    %147 = vector.broadcast %146 : f32 to vector<1x128xf32>
    %148 = arith.mulf %4, %147 : vector<1x128xf32>
    %149 = arith.addf %145, %148 : vector<1x128xf32>
    %c3_77 = arith.constant 3 : index
    %c5_78 = arith.constant 5 : index
    %150 = memref.load %arg1[%c3_77, %c5_78] : memref<6x8xf32, #tpu.memory_space<smem>>
    %151 = vector.broadcast %150 : f32 to vector<1x128xf32>
    %152 = arith.mulf %5, %151 : vector<1x128xf32>
    %153 = arith.addf %149, %152 : vector<1x128xf32>
    %c3_79 = arith.constant 3 : index
    %c6_80 = arith.constant 6 : index
    %154 = memref.load %arg1[%c3_79, %c6_80] : memref<6x8xf32, #tpu.memory_space<smem>>
    %155 = vector.broadcast %154 : f32 to vector<1x128xf32>
    %156 = arith.mulf %6, %155 : vector<1x128xf32>
    %157 = arith.addf %153, %156 : vector<1x128xf32>
    %c3_81 = arith.constant 3 : index
    %c7_82 = arith.constant 7 : index
    %158 = memref.load %arg1[%c3_81, %c7_82] : memref<6x8xf32, #tpu.memory_space<smem>>
    %159 = vector.broadcast %158 : f32 to vector<1x128xf32>
    %160 = arith.mulf %7, %159 : vector<1x128xf32>
    %161 = arith.addf %157, %160 : vector<1x128xf32>
    %c3_83 = arith.constant 3 : index
    %162 = memref.load %arg2[%c3_83] : memref<6xf32, #tpu.memory_space<smem>>
    %163 = vector.broadcast %162 : f32 to vector<1x128xf32>
    %164 = arith.addf %161, %163 : vector<1x128xf32>
    %cst_84 = arith.constant 5.000000e-01 : f32
    %165 = vector.broadcast %cst_84 : f32 to vector<1x128xf32>
    %166 = arith.mulf %165, %164 : vector<1x128xf32>
    %167 = math.tanh %166 : vector<1x128xf32>
    %cst_85 = arith.constant 5.000000e-01 : f32
    %168 = vector.broadcast %cst_85 : f32 to vector<1x128xf32>
    %169 = arith.mulf %168, %167 : vector<1x128xf32>
    %cst_86 = arith.constant 5.000000e-01 : f32
    %170 = vector.broadcast %cst_86 : f32 to vector<1x128xf32>
    %171 = arith.addf %169, %170 : vector<1x128xf32>
    %c4_87 = arith.constant 4 : index
    %c0_88 = arith.constant 0 : index
    %172 = memref.load %arg1[%c4_87, %c0_88] : memref<6x8xf32, #tpu.memory_space<smem>>
    %173 = vector.broadcast %172 : f32 to vector<1x128xf32>
    %174 = arith.mulf %0, %173 : vector<1x128xf32>
    %c4_89 = arith.constant 4 : index
    %c1_90 = arith.constant 1 : index
    %175 = memref.load %arg1[%c4_89, %c1_90] : memref<6x8xf32, #tpu.memory_space<smem>>
    %176 = vector.broadcast %175 : f32 to vector<1x128xf32>
    %177 = arith.mulf %1, %176 : vector<1x128xf32>
    %178 = arith.addf %174, %177 : vector<1x128xf32>
    %c4_91 = arith.constant 4 : index
    %c2_92 = arith.constant 2 : index
    %179 = memref.load %arg1[%c4_91, %c2_92] : memref<6x8xf32, #tpu.memory_space<smem>>
    %180 = vector.broadcast %179 : f32 to vector<1x128xf32>
    %181 = arith.mulf %2, %180 : vector<1x128xf32>
    %182 = arith.addf %178, %181 : vector<1x128xf32>
    %c4_93 = arith.constant 4 : index
    %c3_94 = arith.constant 3 : index
    %183 = memref.load %arg1[%c4_93, %c3_94] : memref<6x8xf32, #tpu.memory_space<smem>>
    %184 = vector.broadcast %183 : f32 to vector<1x128xf32>
    %185 = arith.mulf %3, %184 : vector<1x128xf32>
    %186 = arith.addf %182, %185 : vector<1x128xf32>
    %c4_95 = arith.constant 4 : index
    %c4_96 = arith.constant 4 : index
    %187 = memref.load %arg1[%c4_95, %c4_96] : memref<6x8xf32, #tpu.memory_space<smem>>
    %188 = vector.broadcast %187 : f32 to vector<1x128xf32>
    %189 = arith.mulf %4, %188 : vector<1x128xf32>
    %190 = arith.addf %186, %189 : vector<1x128xf32>
    %c4_97 = arith.constant 4 : index
    %c5_98 = arith.constant 5 : index
    %191 = memref.load %arg1[%c4_97, %c5_98] : memref<6x8xf32, #tpu.memory_space<smem>>
    %192 = vector.broadcast %191 : f32 to vector<1x128xf32>
    %193 = arith.mulf %5, %192 : vector<1x128xf32>
    %194 = arith.addf %190, %193 : vector<1x128xf32>
    %c4_99 = arith.constant 4 : index
    %c6_100 = arith.constant 6 : index
    %195 = memref.load %arg1[%c4_99, %c6_100] : memref<6x8xf32, #tpu.memory_space<smem>>
    %196 = vector.broadcast %195 : f32 to vector<1x128xf32>
    %197 = arith.mulf %6, %196 : vector<1x128xf32>
    %198 = arith.addf %194, %197 : vector<1x128xf32>
    %c4_101 = arith.constant 4 : index
    %c7_102 = arith.constant 7 : index
    %199 = memref.load %arg1[%c4_101, %c7_102] : memref<6x8xf32, #tpu.memory_space<smem>>
    %200 = vector.broadcast %199 : f32 to vector<1x128xf32>
    %201 = arith.mulf %7, %200 : vector<1x128xf32>
    %202 = arith.addf %198, %201 : vector<1x128xf32>
    %c4_103 = arith.constant 4 : index
    %203 = memref.load %arg2[%c4_103] : memref<6xf32, #tpu.memory_space<smem>>
    %204 = vector.broadcast %203 : f32 to vector<1x128xf32>
    %205 = arith.addf %202, %204 : vector<1x128xf32>
    %cst_104 = arith.constant 5.000000e-01 : f32
    %206 = vector.broadcast %cst_104 : f32 to vector<1x128xf32>
    %207 = arith.mulf %206, %205 : vector<1x128xf32>
    %208 = math.tanh %207 : vector<1x128xf32>
    %cst_105 = arith.constant 5.000000e-01 : f32
    %209 = vector.broadcast %cst_105 : f32 to vector<1x128xf32>
    %210 = arith.mulf %209, %208 : vector<1x128xf32>
    %cst_106 = arith.constant 5.000000e-01 : f32
    %211 = vector.broadcast %cst_106 : f32 to vector<1x128xf32>
    %212 = arith.addf %210, %211 : vector<1x128xf32>
    %c5_107 = arith.constant 5 : index
    %c0_108 = arith.constant 0 : index
    %213 = memref.load %arg1[%c5_107, %c0_108] : memref<6x8xf32, #tpu.memory_space<smem>>
    %214 = vector.broadcast %213 : f32 to vector<1x128xf32>
    %215 = arith.mulf %0, %214 : vector<1x128xf32>
    %c5_109 = arith.constant 5 : index
    %c1_110 = arith.constant 1 : index
    %216 = memref.load %arg1[%c5_109, %c1_110] : memref<6x8xf32, #tpu.memory_space<smem>>
    %217 = vector.broadcast %216 : f32 to vector<1x128xf32>
    %218 = arith.mulf %1, %217 : vector<1x128xf32>
    %219 = arith.addf %215, %218 : vector<1x128xf32>
    %c5_111 = arith.constant 5 : index
    %c2_112 = arith.constant 2 : index
    %220 = memref.load %arg1[%c5_111, %c2_112] : memref<6x8xf32, #tpu.memory_space<smem>>
    %221 = vector.broadcast %220 : f32 to vector<1x128xf32>
    %222 = arith.mulf %2, %221 : vector<1x128xf32>
    %223 = arith.addf %219, %222 : vector<1x128xf32>
    %c5_113 = arith.constant 5 : index
    %c3_114 = arith.constant 3 : index
    %224 = memref.load %arg1[%c5_113, %c3_114] : memref<6x8xf32, #tpu.memory_space<smem>>
    %225 = vector.broadcast %224 : f32 to vector<1x128xf32>
    %226 = arith.mulf %3, %225 : vector<1x128xf32>
    %227 = arith.addf %223, %226 : vector<1x128xf32>
    %c5_115 = arith.constant 5 : index
    %c4_116 = arith.constant 4 : index
    %228 = memref.load %arg1[%c5_115, %c4_116] : memref<6x8xf32, #tpu.memory_space<smem>>
    %229 = vector.broadcast %228 : f32 to vector<1x128xf32>
    %230 = arith.mulf %4, %229 : vector<1x128xf32>
    %231 = arith.addf %227, %230 : vector<1x128xf32>
    %c5_117 = arith.constant 5 : index
    %c5_118 = arith.constant 5 : index
    %232 = memref.load %arg1[%c5_117, %c5_118] : memref<6x8xf32, #tpu.memory_space<smem>>
    %233 = vector.broadcast %232 : f32 to vector<1x128xf32>
    %234 = arith.mulf %5, %233 : vector<1x128xf32>
    %235 = arith.addf %231, %234 : vector<1x128xf32>
    %c5_119 = arith.constant 5 : index
    %c6_120 = arith.constant 6 : index
    %236 = memref.load %arg1[%c5_119, %c6_120] : memref<6x8xf32, #tpu.memory_space<smem>>
    %237 = vector.broadcast %236 : f32 to vector<1x128xf32>
    %238 = arith.mulf %6, %237 : vector<1x128xf32>
    %239 = arith.addf %235, %238 : vector<1x128xf32>
    %c5_121 = arith.constant 5 : index
    %c7_122 = arith.constant 7 : index
    %240 = memref.load %arg1[%c5_121, %c7_122] : memref<6x8xf32, #tpu.memory_space<smem>>
    %241 = vector.broadcast %240 : f32 to vector<1x128xf32>
    %242 = arith.mulf %7, %241 : vector<1x128xf32>
    %243 = arith.addf %239, %242 : vector<1x128xf32>
    %c5_123 = arith.constant 5 : index
    %244 = memref.load %arg2[%c5_123] : memref<6xf32, #tpu.memory_space<smem>>
    %245 = vector.broadcast %244 : f32 to vector<1x128xf32>
    %246 = arith.addf %243, %245 : vector<1x128xf32>
    %cst_124 = arith.constant 5.000000e-01 : f32
    %247 = vector.broadcast %cst_124 : f32 to vector<1x128xf32>
    %248 = arith.mulf %247, %246 : vector<1x128xf32>
    %249 = math.tanh %248 : vector<1x128xf32>
    %cst_125 = arith.constant 5.000000e-01 : f32
    %250 = vector.broadcast %cst_125 : f32 to vector<1x128xf32>
    %251 = arith.mulf %250, %249 : vector<1x128xf32>
    %cst_126 = arith.constant 5.000000e-01 : f32
    %252 = vector.broadcast %cst_126 : f32 to vector<1x128xf32>
    %253 = arith.addf %251, %252 : vector<1x128xf32>
    %c0_127 = arith.constant 0 : index
    %c0_128 = arith.constant 0 : index
    %254 = memref.load %arg3[%c0_127, %c0_128] : memref<4x6xf32, #tpu.memory_space<smem>>
    %255 = vector.broadcast %254 : f32 to vector<1x128xf32>
    %256 = arith.mulf %48, %255 : vector<1x128xf32>
    %c0_129 = arith.constant 0 : index
    %c1_130 = arith.constant 1 : index
    %257 = memref.load %arg3[%c0_129, %c1_130] : memref<4x6xf32, #tpu.memory_space<smem>>
    %258 = vector.broadcast %257 : f32 to vector<1x128xf32>
    %259 = arith.mulf %89, %258 : vector<1x128xf32>
    %260 = arith.addf %256, %259 : vector<1x128xf32>
    %c0_131 = arith.constant 0 : index
    %c2_132 = arith.constant 2 : index
    %261 = memref.load %arg3[%c0_131, %c2_132] : memref<4x6xf32, #tpu.memory_space<smem>>
    %262 = vector.broadcast %261 : f32 to vector<1x128xf32>
    %263 = arith.mulf %130, %262 : vector<1x128xf32>
    %264 = arith.addf %260, %263 : vector<1x128xf32>
    %c0_133 = arith.constant 0 : index
    %c3_134 = arith.constant 3 : index
    %265 = memref.load %arg3[%c0_133, %c3_134] : memref<4x6xf32, #tpu.memory_space<smem>>
    %266 = vector.broadcast %265 : f32 to vector<1x128xf32>
    %267 = arith.mulf %171, %266 : vector<1x128xf32>
    %268 = arith.addf %264, %267 : vector<1x128xf32>
    %c0_135 = arith.constant 0 : index
    %c4_136 = arith.constant 4 : index
    %269 = memref.load %arg3[%c0_135, %c4_136] : memref<4x6xf32, #tpu.memory_space<smem>>
    %270 = vector.broadcast %269 : f32 to vector<1x128xf32>
    %271 = arith.mulf %212, %270 : vector<1x128xf32>
    %272 = arith.addf %268, %271 : vector<1x128xf32>
    %c0_137 = arith.constant 0 : index
    %c5_138 = arith.constant 5 : index
    %273 = memref.load %arg3[%c0_137, %c5_138] : memref<4x6xf32, #tpu.memory_space<smem>>
    %274 = vector.broadcast %273 : f32 to vector<1x128xf32>
    %275 = arith.mulf %253, %274 : vector<1x128xf32>
    %276 = arith.addf %272, %275 : vector<1x128xf32>
    %c0_139 = arith.constant 0 : index
    %277 = memref.load %arg4[%c0_139] : memref<4xf32, #tpu.memory_space<smem>>
    %278 = vector.broadcast %277 : f32 to vector<1x128xf32>
    %279 = arith.addf %276, %278 : vector<1x128xf32>
    %cst_140 = arith.constant 5.000000e-01 : f32
    %280 = vector.broadcast %cst_140 : f32 to vector<1x128xf32>
    %281 = arith.mulf %280, %279 : vector<1x128xf32>
    %282 = math.tanh %281 : vector<1x128xf32>
    %cst_141 = arith.constant 5.000000e-01 : f32
    %283 = vector.broadcast %cst_141 : f32 to vector<1x128xf32>
    %284 = arith.mulf %283, %282 : vector<1x128xf32>
    %cst_142 = arith.constant 5.000000e-01 : f32
    %285 = vector.broadcast %cst_142 : f32 to vector<1x128xf32>
    %286 = arith.addf %284, %285 : vector<1x128xf32>
    %c1_143 = arith.constant 1 : index
    %c0_144 = arith.constant 0 : index
    %287 = memref.load %arg3[%c1_143, %c0_144] : memref<4x6xf32, #tpu.memory_space<smem>>
    %288 = vector.broadcast %287 : f32 to vector<1x128xf32>
    %289 = arith.mulf %48, %288 : vector<1x128xf32>
    %c1_145 = arith.constant 1 : index
    %c1_146 = arith.constant 1 : index
    %290 = memref.load %arg3[%c1_145, %c1_146] : memref<4x6xf32, #tpu.memory_space<smem>>
    %291 = vector.broadcast %290 : f32 to vector<1x128xf32>
    %292 = arith.mulf %89, %291 : vector<1x128xf32>
    %293 = arith.addf %289, %292 : vector<1x128xf32>
    %c1_147 = arith.constant 1 : index
    %c2_148 = arith.constant 2 : index
    %294 = memref.load %arg3[%c1_147, %c2_148] : memref<4x6xf32, #tpu.memory_space<smem>>
    %295 = vector.broadcast %294 : f32 to vector<1x128xf32>
    %296 = arith.mulf %130, %295 : vector<1x128xf32>
    %297 = arith.addf %293, %296 : vector<1x128xf32>
    %c1_149 = arith.constant 1 : index
    %c3_150 = arith.constant 3 : index
    %298 = memref.load %arg3[%c1_149, %c3_150] : memref<4x6xf32, #tpu.memory_space<smem>>
    %299 = vector.broadcast %298 : f32 to vector<1x128xf32>
    %300 = arith.mulf %171, %299 : vector<1x128xf32>
    %301 = arith.addf %297, %300 : vector<1x128xf32>
    %c1_151 = arith.constant 1 : index
    %c4_152 = arith.constant 4 : index
    %302 = memref.load %arg3[%c1_151, %c4_152] : memref<4x6xf32, #tpu.memory_space<smem>>
    %303 = vector.broadcast %302 : f32 to vector<1x128xf32>
    %304 = arith.mulf %212, %303 : vector<1x128xf32>
    %305 = arith.addf %301, %304 : vector<1x128xf32>
    %c1_153 = arith.constant 1 : index
    %c5_154 = arith.constant 5 : index
    %306 = memref.load %arg3[%c1_153, %c5_154] : memref<4x6xf32, #tpu.memory_space<smem>>
    %307 = vector.broadcast %306 : f32 to vector<1x128xf32>
    %308 = arith.mulf %253, %307 : vector<1x128xf32>
    %309 = arith.addf %305, %308 : vector<1x128xf32>
    %c1_155 = arith.constant 1 : index
    %310 = memref.load %arg4[%c1_155] : memref<4xf32, #tpu.memory_space<smem>>
    %311 = vector.broadcast %310 : f32 to vector<1x128xf32>
    %312 = arith.addf %309, %311 : vector<1x128xf32>
    %cst_156 = arith.constant 5.000000e-01 : f32
    %313 = vector.broadcast %cst_156 : f32 to vector<1x128xf32>
    %314 = arith.mulf %313, %312 : vector<1x128xf32>
    %315 = math.tanh %314 : vector<1x128xf32>
    %cst_157 = arith.constant 5.000000e-01 : f32
    %316 = vector.broadcast %cst_157 : f32 to vector<1x128xf32>
    %317 = arith.mulf %316, %315 : vector<1x128xf32>
    %cst_158 = arith.constant 5.000000e-01 : f32
    %318 = vector.broadcast %cst_158 : f32 to vector<1x128xf32>
    %319 = arith.addf %317, %318 : vector<1x128xf32>
    %c2_159 = arith.constant 2 : index
    %c0_160 = arith.constant 0 : index
    %320 = memref.load %arg3[%c2_159, %c0_160] : memref<4x6xf32, #tpu.memory_space<smem>>
    %321 = vector.broadcast %320 : f32 to vector<1x128xf32>
    %322 = arith.mulf %48, %321 : vector<1x128xf32>
    %c2_161 = arith.constant 2 : index
    %c1_162 = arith.constant 1 : index
    %323 = memref.load %arg3[%c2_161, %c1_162] : memref<4x6xf32, #tpu.memory_space<smem>>
    %324 = vector.broadcast %323 : f32 to vector<1x128xf32>
    %325 = arith.mulf %89, %324 : vector<1x128xf32>
    %326 = arith.addf %322, %325 : vector<1x128xf32>
    %c2_163 = arith.constant 2 : index
    %c2_164 = arith.constant 2 : index
    %327 = memref.load %arg3[%c2_163, %c2_164] : memref<4x6xf32, #tpu.memory_space<smem>>
    %328 = vector.broadcast %327 : f32 to vector<1x128xf32>
    %329 = arith.mulf %130, %328 : vector<1x128xf32>
    %330 = arith.addf %326, %329 : vector<1x128xf32>
    %c2_165 = arith.constant 2 : index
    %c3_166 = arith.constant 3 : index
    %331 = memref.load %arg3[%c2_165, %c3_166] : memref<4x6xf32, #tpu.memory_space<smem>>
    %332 = vector.broadcast %331 : f32 to vector<1x128xf32>
    %333 = arith.mulf %171, %332 : vector<1x128xf32>
    %334 = arith.addf %330, %333 : vector<1x128xf32>
    %c2_167 = arith.constant 2 : index
    %c4_168 = arith.constant 4 : index
    %335 = memref.load %arg3[%c2_167, %c4_168] : memref<4x6xf32, #tpu.memory_space<smem>>
    %336 = vector.broadcast %335 : f32 to vector<1x128xf32>
    %337 = arith.mulf %212, %336 : vector<1x128xf32>
    %338 = arith.addf %334, %337 : vector<1x128xf32>
    %c2_169 = arith.constant 2 : index
    %c5_170 = arith.constant 5 : index
    %339 = memref.load %arg3[%c2_169, %c5_170] : memref<4x6xf32, #tpu.memory_space<smem>>
    %340 = vector.broadcast %339 : f32 to vector<1x128xf32>
    %341 = arith.mulf %253, %340 : vector<1x128xf32>
    %342 = arith.addf %338, %341 : vector<1x128xf32>
    %c2_171 = arith.constant 2 : index
    %343 = memref.load %arg4[%c2_171] : memref<4xf32, #tpu.memory_space<smem>>
    %344 = vector.broadcast %343 : f32 to vector<1x128xf32>
    %345 = arith.addf %342, %344 : vector<1x128xf32>
    %cst_172 = arith.constant 5.000000e-01 : f32
    %346 = vector.broadcast %cst_172 : f32 to vector<1x128xf32>
    %347 = arith.mulf %346, %345 : vector<1x128xf32>
    %348 = math.tanh %347 : vector<1x128xf32>
    %cst_173 = arith.constant 5.000000e-01 : f32
    %349 = vector.broadcast %cst_173 : f32 to vector<1x128xf32>
    %350 = arith.mulf %349, %348 : vector<1x128xf32>
    %cst_174 = arith.constant 5.000000e-01 : f32
    %351 = vector.broadcast %cst_174 : f32 to vector<1x128xf32>
    %352 = arith.addf %350, %351 : vector<1x128xf32>
    %c3_175 = arith.constant 3 : index
    %c0_176 = arith.constant 0 : index
    %353 = memref.load %arg3[%c3_175, %c0_176] : memref<4x6xf32, #tpu.memory_space<smem>>
    %354 = vector.broadcast %353 : f32 to vector<1x128xf32>
    %355 = arith.mulf %48, %354 : vector<1x128xf32>
    %c3_177 = arith.constant 3 : index
    %c1_178 = arith.constant 1 : index
    %356 = memref.load %arg3[%c3_177, %c1_178] : memref<4x6xf32, #tpu.memory_space<smem>>
    %357 = vector.broadcast %356 : f32 to vector<1x128xf32>
    %358 = arith.mulf %89, %357 : vector<1x128xf32>
    %359 = arith.addf %355, %358 : vector<1x128xf32>
    %c3_179 = arith.constant 3 : index
    %c2_180 = arith.constant 2 : index
    %360 = memref.load %arg3[%c3_179, %c2_180] : memref<4x6xf32, #tpu.memory_space<smem>>
    %361 = vector.broadcast %360 : f32 to vector<1x128xf32>
    %362 = arith.mulf %130, %361 : vector<1x128xf32>
    %363 = arith.addf %359, %362 : vector<1x128xf32>
    %c3_181 = arith.constant 3 : index
    %c3_182 = arith.constant 3 : index
    %364 = memref.load %arg3[%c3_181, %c3_182] : memref<4x6xf32, #tpu.memory_space<smem>>
    %365 = vector.broadcast %364 : f32 to vector<1x128xf32>
    %366 = arith.mulf %171, %365 : vector<1x128xf32>
    %367 = arith.addf %363, %366 : vector<1x128xf32>
    %c3_183 = arith.constant 3 : index
    %c4_184 = arith.constant 4 : index
    %368 = memref.load %arg3[%c3_183, %c4_184] : memref<4x6xf32, #tpu.memory_space<smem>>
    %369 = vector.broadcast %368 : f32 to vector<1x128xf32>
    %370 = arith.mulf %212, %369 : vector<1x128xf32>
    %371 = arith.addf %367, %370 : vector<1x128xf32>
    %c3_185 = arith.constant 3 : index
    %c5_186 = arith.constant 5 : index
    %372 = memref.load %arg3[%c3_185, %c5_186] : memref<4x6xf32, #tpu.memory_space<smem>>
    %373 = vector.broadcast %372 : f32 to vector<1x128xf32>
    %374 = arith.mulf %253, %373 : vector<1x128xf32>
    %375 = arith.addf %371, %374 : vector<1x128xf32>
    %c3_187 = arith.constant 3 : index
    %376 = memref.load %arg4[%c3_187] : memref<4xf32, #tpu.memory_space<smem>>
    %377 = vector.broadcast %376 : f32 to vector<1x128xf32>
    %378 = arith.addf %375, %377 : vector<1x128xf32>
    %cst_188 = arith.constant 5.000000e-01 : f32
    %379 = vector.broadcast %cst_188 : f32 to vector<1x128xf32>
    %380 = arith.mulf %379, %378 : vector<1x128xf32>
    %381 = math.tanh %380 : vector<1x128xf32>
    %cst_189 = arith.constant 5.000000e-01 : f32
    %382 = vector.broadcast %cst_189 : f32 to vector<1x128xf32>
    %383 = arith.mulf %382, %381 : vector<1x128xf32>
    %cst_190 = arith.constant 5.000000e-01 : f32
    %384 = vector.broadcast %cst_190 : f32 to vector<1x128xf32>
    %385 = arith.addf %383, %384 : vector<1x128xf32>
    %c0_191 = arith.constant 0 : index
    %c0_192 = arith.constant 0 : index
    %386 = memref.load %arg5[%c0_191, %c0_192] : memref<1x4xf32, #tpu.memory_space<smem>>
    %387 = vector.broadcast %386 : f32 to vector<1x128xf32>
    %388 = arith.mulf %286, %387 : vector<1x128xf32>
    %c0_193 = arith.constant 0 : index
    %c1_194 = arith.constant 1 : index
    %389 = memref.load %arg5[%c0_193, %c1_194] : memref<1x4xf32, #tpu.memory_space<smem>>
    %390 = vector.broadcast %389 : f32 to vector<1x128xf32>
    %391 = arith.mulf %319, %390 : vector<1x128xf32>
    %392 = arith.addf %388, %391 : vector<1x128xf32>
    %c0_195 = arith.constant 0 : index
    %c2_196 = arith.constant 2 : index
    %393 = memref.load %arg5[%c0_195, %c2_196] : memref<1x4xf32, #tpu.memory_space<smem>>
    %394 = vector.broadcast %393 : f32 to vector<1x128xf32>
    %395 = arith.mulf %352, %394 : vector<1x128xf32>
    %396 = arith.addf %392, %395 : vector<1x128xf32>
    %c0_197 = arith.constant 0 : index
    %c3_198 = arith.constant 3 : index
    %397 = memref.load %arg5[%c0_197, %c3_198] : memref<1x4xf32, #tpu.memory_space<smem>>
    %398 = vector.broadcast %397 : f32 to vector<1x128xf32>
    %399 = arith.mulf %385, %398 : vector<1x128xf32>
    %400 = arith.addf %396, %399 : vector<1x128xf32>
    %c0_199 = arith.constant 0 : index
    %401 = memref.load %arg6[%c0_199] : memref<1xf32, #tpu.memory_space<smem>>
    %402 = vector.broadcast %401 : f32 to vector<1x128xf32>
    %403 = arith.addf %400, %402 : vector<1x128xf32>
    %cst_200 = arith.constant 5.000000e-01 : f32
    %404 = vector.broadcast %cst_200 : f32 to vector<1x128xf32>
    %405 = arith.mulf %404, %403 : vector<1x128xf32>
    %406 = math.tanh %405 : vector<1x128xf32>
    %cst_201 = arith.constant 5.000000e-01 : f32
    %407 = vector.broadcast %cst_201 : f32 to vector<1x128xf32>
    %408 = arith.mulf %407, %406 : vector<1x128xf32>
    %cst_202 = arith.constant 5.000000e-01 : f32
    %409 = vector.broadcast %cst_202 : f32 to vector<1x128xf32>
    %410 = arith.addf %408, %409 : vector<1x128xf32>
    %c0_203 = arith.constant 0 : index
    %c0_204 = arith.constant 0 : index
    %411 = vector.load %arg8[%c0_203, %c0_204] : memref<1x128xf32, #tpu.memory_space<vmem>>, vector<1x128xf32>
    tpu.vector_store %arg8[%c0_203, %c0_204], %410 {strides = array<i32>} : memref<1x128xf32, #tpu.memory_space<vmem>>, vector<1x128xf32>,
    return
  }
  func.func @transform_0(%arg0: i32) -> (i32, i32) {
    %c0_i32 = arith.constant 0 : i32
    %c0_i32_0 = arith.constant 0 : i32
    %c0_i32_1 = arith.constant 0 : i32
    return %c0_i32, %c0_i32_0 : i32, i32
  }
  func.func @transform_1(%arg0: i32) -> i32 {
    %c0_i32 = arith.constant 0 : i32
    %c0_i32_0 = arith.constant 0 : i32
    return %c0_i32 : i32
  }
  func.func @transform_2(%arg0: i32) -> (i32, i32) {
    %c0_i32 = arith.constant 0 : i32
    %c0_i32_0 = arith.constant 0 : i32
    %c0_i32_1 = arith.constant 0 : i32
    return %c0_i32, %c0_i32_0 : i32, i32
  }
  func.func @transform_3(%arg0: i32) -> i32 {
    %c0_i32 = arith.constant 0 : i32
    %c0_i32_0 = arith.constant 0 : i32
    return %c0_i32 : i32
  }
  func.func @transform_4(%arg0: i32) -> (i32, i32) {
    %c0_i32 = arith.constant 0 : i32
    %c0_i32_0 = arith.constant 0 : i32
    %c0_i32_1 = arith.constant 0 : i32
    return %c0_i32, %c0_i32_0 : i32, i32
  }
  func.func @transform_5(%arg0: i32) -> i32 {
    %c0_i32 = arith.constant 0 : i32
    %c0_i32_0 = arith.constant 0 : i32
    return %c0_i32 : i32
  }
  func.func @transform_6(%arg0: i32) -> (i32, i32) {
    %c0_i32 = arith.constant 0 : i32
    %c0_i32_0 = arith.constant 0 : i32
    return %c0_i32, %arg0 : i32, i32
  }
  func.func @transform_7(%arg0: i32) -> (i32, i32) {
    %c0_i32 = arith.constant 0 : i32
    %c0_i32_0 = arith.constant 0 : i32
    return %c0_i32, %arg0 : i32, i32
  }
}

</mosaic_0001>

<bundles_post_ra>
// kernel: mlp_forward.1
= control target key start
LH: loop header
LB: loop body
LE: loop exit
PB: predicated region body
PF: predicated region fallthrough
CT: control target
= control target key end

     0   :  { %13 = vsyncpa [#allocation4], 0  ;;  %s968_s0 = inlined_call_operand.vmem [shape: f32[6,8], index: 0, kind: input, shape index: {}]   ;;  %s969_s1 = inlined_call_operand.vmem [shape: f32[6], index: 1, kind: input, shape index: {}]   ;;  %s970_s2 = inlined_call_operand.vmem [shape: f32[4,6], index: 2, kind: input, shape index: {}]   ;;  %s971_s3 = inlined_call_operand.vmem [shape: f32[4], index: 3, kind: input, shape index: {}]   ;;  %s972_s4 = inlined_call_operand.vmem [shape: f32[1,4], index: 4, kind: input, shape index: {}]   ;;  %s973_s5 = inlined_call_operand.<no memory space> [shape: f32[1], index: 5, kind: input, shape index: {}]   ;;  %s974_s6 = inlined_call_operand.vmem [shape: f32[8,128], index: 6, kind: input, shape index: {}]   ;;  %s975_s7 = inlined_call_operand.vmem [shape: f32[1,128], index: 7, kind: output, shape index: {}]  }
   0x1   :  { %14 = vsyncpa [#allocation6], 0  ;;  %s30_s26 = sshll.u32 %s969_s1, 4  ;;  %s31_s26 = int_to_ptr.vmem [resolvable:$true] %s30_s26 }
   0x2   :  { %15 = vsyncpa [#allocation9], 0  ;;  %s48_s29 = sshll.u32 %s971_s3, 4  ;;  %s646_s30 = smov [#allocation5]   ;;  %s49_s29 = int_to_ptr.vmem [resolvable:$true] %s48_s29 }
   0x3   :  { %33 = dma.vmem_to_smem %s31_s26, 16, %s646_s30, [#allocation6]  }
   0x4   :  { %s647_s8 = smov [#allocation8]   ;;  %s21_s11 = sshll.u32 %s968_s0, 4  ;;  %s22_s11 = int_to_ptr.vmem [resolvable:$true] %s21_s11 }
   0x5   :  { %51 = dma.vmem_to_smem %s49_s29, 16, %s647_s8, [#allocation9]  }
   0x6   :  { %s39_s1 = sshll.u32 %s970_s2, 4  ;;  %s648_s14 = smov [#allocation3]   ;;  %s40_s1 = int_to_ptr.vmem [resolvable:$true] %s39_s1 }
   0x7   :  { %24 = dma.vmem_to_smem %s22_s11, 128, %s648_s14, [#allocation4]  }
   0x8   :  { %s649_s15 = smov [#allocation7]   ;;  %s57_s17 = sshll.u32 %s972_s4, 4  ;;  %s58_s17 = int_to_ptr.vmem [resolvable:$true] %s57_s17 }
   0x9   :  { %42 = dma.vmem_to_smem %s40_s1, 64, %s649_s15, [#allocation6]  }
   0xa   :  { %s650_s18 = smov [#allocation10]  }
   0xb   :  { %60 = dma.vmem_to_smem %s58_s17, 16, %s650_s18, [#allocation9]  }
   0xc   :  { %640 = dma.done.wait [#allocation4], 128  }
   0xd   :  { %641 = vsyncadd [#allocation4], 4294967168 }
   0xe   :  { %642 = dma.done.wait [#allocation6], 80  }
   0xf   :  { %643 = vsyncadd [#allocation6], 4294967216 }
  0x10   :  { %644 = dma.done.wait [#allocation9], 32  }
  0x11   :  { %645 = vsyncadd [#allocation9], 4294967264 }
  0x12   :  { %85 = sfence }
  0x13   :  { %s94_s0 = sld [smem:[#allocation3]]  ;;  %v709_v0 = vld [vmem:[%s974_s6] sm:$0x1]  ;;  %v714_v1 = vld [vmem:[%s974_s6 + $0x1] sm:$0x1] }
  0x14   :  { %s472_s2 = sld [smem:[#allocation3 + $0x1]]  ;;  %v721_v2 = vld [vmem:[%s974_s6 + $0x2] sm:$0x1]  ;;  %v734_v8 = vld [vmem:[%s974_s6 + $0x3] sm:$0x1] }
  0x15   :  { %s473_s19 = sld [smem:[#allocation3 + $0x2]]  ;;  %v741_v14 = vld [vmem:[%s974_s6 + $0x4] sm:$0x1]  ;;  %v754_v21 = vld [vmem:[%s974_s6 + $0x5] sm:$0x1] }
  0x16   :  { %s474_s20 = sld [smem:[#allocation3 + $0x3]]  ;;  %v767_v33 = vld [vmem:[%s974_s6 + $0x6] sm:$0x1]  ;;  %v784_v44 = vld [vmem:[%s974_s6 + $0x7] sm:$0x1] }
  0x17   :  { %s475_s4 = sld [smem:[#allocation3 + $0x4]] }
  0x18   :  { %s716_s25 = sld [smem:[#allocation3 + $0x5]] }
  0x19   :  { %v95_v3 = vstv %s94_s0  ;;  %s723_s28 = sld [smem:[#allocation3 + $0x6]] }
  0x1a   :  { %v96_v4 = vmul.f32 %v95_v3, %v709_v0  ;;  %v98_v5 = vstv %s472_s2  ;;  %s726_s29 = sld [smem:[#allocation3 + $0x7]] }
  0x1b   :  { %v99_v6 = vmul.f32 %v98_v5, %v714_v1  ;;  %v102_v7 = vstv %s473_s19  ;;  %s729_s30 = sld [smem:[#allocation5]] }
  0x1c   :  { %v103_v9 = vmul.f32 %v102_v7, %v721_v2  ;;  %v106_v10 = vstv %s474_s20  ;;  %s479_s10 = sld [smem:[#allocation3 + $0x80]] }
  0x1d   :  { %v100_v11 = vadd.f32 %v99_v6, %v96_v4  ;;  %s480_s11 = sld [smem:[#allocation3 + $0x81]]  ;;  %v107_v13 = vmul.f32 %v106_v10, %v734_v8  ;;  %v110_v15 = vstv %s475_s4 }
  0x1e   :  { %s481_s12 = sld [smem:[#allocation3 + $0x82]]  ;;  %v111_v18 = vmul.f32 %v110_v15, %v741_v14  ;;  %v114_v22 = vstv %s716_s25 }
  0x1f   :  { %v104_v12 = vadd.f32 %v103_v9, %v100_v11  ;;  %s482_s13 = sld [smem:[#allocation3 + $0x83]]  ;;  %v115_v31 = vmul.f32 %v114_v22, %v754_v21  ;;  %v118_v34 = vstv %s723_s28 }
  0x20   :  { %s483_s15 = sld [smem:[#allocation3 + $0x84]]  ;;  %v119_v41 = vmul.f32 %v118_v34, %v767_v33  ;;  %v122_v42 = vstv %s726_s29 }
  0x21   :  { %s743_s3 = sld [smem:[#allocation3 + $0x85]]  ;;  %v108_v17 = vadd.f32 %v107_v13, %v104_v12  ;;  %v123_v55 = vmul.f32 %v122_v42, %v784_v44  ;;  %v126_v5 = vstv %s729_s30 }
  0x22   :  { %v133_v16 = vstv %s479_s10  ;;  %s745_s16 = sld [smem:[#allocation3 + $0x86]] }
  0x23   :  { %v134_v19 = vmul.f32 %v133_v16, %v709_v0  ;;  %v136_v20 = vstv %s480_s11  ;;  %s749_s17 = sld [smem:[#allocation3 + $0x87]]  ;;  %v112_v30 = vadd.f32 %v111_v18, %v108_v17 }
  0x24   :  { %v137_v23 = vmul.f32 %v136_v20, %v714_v1  ;;  %v140_v24 = vstv %s481_s12  ;;  %s758_s2 = sld [smem:[#allocation5 + $0x1]] }
  0x25   :  { %v141_v25 = vmul.f32 %v140_v24, %v721_v2  ;;  %v144_v26 = vstv %s482_s13  ;;  %s488_s19 = sld [smem:[#allocation3 + $0x100]]  ;;  %v116_v40 = vadd.f32 %v115_v31, %v112_v30 }
  0x26   :  { %v138_v27 = vadd.f32 %v137_v23, %v134_v19  ;;  %v145_v28 = vmul.f32 %v144_v26, %v734_v8  ;;  %v148_v29 = vstv %s483_s15  ;;  %s489_s20 = sld [smem:[#allocation3 + $0x101]] }
  0x27   :  { %v152_v32 = vstv %s743_s3  ;;  %s490_s21 = sld [smem:[#allocation3 + $0x102]]  ;;  %v149_v36 = vmul.f32 %v148_v29, %v741_v14  ;;  %v120_v59 = vadd.f32 %v119_v41, %v116_v40 }
  0x28   :  { %v142_v35 = vadd.f32 %v141_v25, %v138_v27  ;;  %s491_s23 = sld [smem:[#allocation3 + $0x103]]  ;;  %v156_v37 = vstv %s745_s16  ;;  %v153_v39 = vmul.f32 %v152_v32, %v754_v21 }
  0x29   :  { %s772_s24 = sld [smem:[#allocation3 + $0x104]]  ;;  %v157_v46 = vmul.f32 %v156_v37, %v767_v33  ;;  %v160_v49 = vstv %s749_s17  ;;  %v124_v9 = vadd.f32 %v123_v55, %v120_v59 }
  0x2a   :  { %v146_v38 = vadd.f32 %v145_v28, %v142_v35  ;;  %s775_s25 = sld [smem:[#allocation3 + $0x105]]  ;;  %v161_v61 = vmul.f32 %v160_v49, %v784_v44  ;;  %v164_v18 = vstv %s758_s2 }
  0x2b   :  { %v171_v43 = vstv %s488_s19  ;;  %s779_s26 = sld [smem:[#allocation3 + $0x106]]  ;;  %v127_v26 = vadd.f32 %v126_v5, %v124_v9 }
  0x2c   :  { %v150_v45 = vadd.f32 %v149_v36, %v146_v38  ;;  %v172_v47 = vmul.f32 %v171_v43, %v709_v0  ;;  %v174_v48 = vstv %s489_s20  ;;  %s788_s8 = sld [smem:[#allocation3 + $0x107]] }
  0x2d   :  { %v175_v50 = vmul.f32 %v174_v48, %v714_v1  ;;  %v178_v51 = vstv %s490_s21  ;;  %s792_s29 = sld [smem:[#allocation5 + $0x2]] }
  0x2e   :  { %v154_v52 = vadd.f32 %v153_v39, %v150_v45  ;;  %v179_v53 = vmul.f32 %v178_v51, %v721_v2  ;;  %v182_v54 = vstv %s491_s23  ;;  %s497_s6 = sld [smem:[#allocation3 + $0x180]]  ;;  %v128_v39 = vmul.f32 0.5, %v127_v26 }
  0x2f   :  { %v176_v56 = vadd.f32 %v175_v50, %v172_v47  ;;  %v183_v57 = vmul.f32 %v182_v54, %v734_v8  ;;  %v186_v58 = vstv %s772_s24  ;;  %s498_s9 = sld [smem:[#allocation3 + $0x181]] }
  0x30   :  { %v158_v60 = vadd.f32 %v157_v46, %v154_v52  ;;  %v190_v62 = vstv %s775_s25  ;;  %s499_s10 = sld [smem:[#allocation3 + $0x182]]  ;;  %v187_v3 = vmul.f32 %v186_v58, %v741_v14  ;;  %558 = vtanh.f32 %v128_v39 }
  0x31   :  { %v180_v63 = vadd.f32 %v179_v53, %v176_v56  ;;  %s500_s11 = sld [smem:[#allocation3 + $0x183]]  ;;  %v194_v4 = vstv %s779_s26  ;;  %v191_v7 = vmul.f32 %v190_v62, %v754_v21 }
  0x32   :  { %s802_s12 = sld [smem:[#allocation3 + $0x184]]  ;;  %v162_v10 = vadd.f32 %v161_v61, %v158_v60  ;;  %v198_v11 = vstv %s788_s8  ;;  %v195_v15 = vmul.f32 %v194_v4, %v767_v33 }
  0x33   :  { %v184_v6 = vadd.f32 %v183_v57, %v180_v63  ;;  %s806_s13 = sld [smem:[#allocation3 + $0x185]]  ;;  %v199_v23 = vmul.f32 %v198_v11, %v784_v44  ;;  %v202_v34 = vstv %s792_s29 }
  0x34   :  { %v209_v12 = vstv %s497_s6  ;;  %s809_s1 = sld [smem:[#allocation3 + $0x186]]  ;;  %v165_v29 = vadd.f32 %v164_v18, %v162_v10 }
  0x35   :  { %v188_v13 = vadd.f32 %v187_v3, %v184_v6  ;;  %v210_v16 = vmul.f32 %v209_v12, %v709_v0  ;;  %v212_v17 = vstv %s498_s9  ;;  %s813_s14 = sld [smem:[#allocation3 + $0x187]] }
  0x36   :  { %v213_v19 = vmul.f32 %v212_v17, %v714_v1  ;;  %v216_v20 = vstv %s499_s10  ;;  %s817_s30 = sld [smem:[#allocation5 + $0x3]]  ;;  %v166_v42 = vmul.f32 0.5, %v165_v29 }
  0x37   :  { %v192_v22 = vadd.f32 %v191_v7, %v188_v13  ;;  %v217_v24 = vmul.f32 %v216_v20, %v721_v2  ;;  %v220_v25 = vstv %s500_s11  ;;  %s506_s15 = sld [smem:[#allocation3 + $0x200]]  ;;  %v559_v13 = vpop.eup %558 }
  0x38   :  { %v214_v27 = vadd.f32 %v213_v19, %v210_v16  ;;  %v221_v28 = vmul.f32 %v220_v25, %v734_v8  ;;  %s507_s3 = sld [smem:[#allocation3 + $0x201]]  ;;  %v224_v31 = vstv %s802_s12  ;;  %560 = vtanh.f32 %v166_v42 }
  0x39   :  { %v196_v30 = vadd.f32 %v195_v15, %v192_v22  ;;  %v228_v32 = vstv %s806_s13  ;;  %s508_s16 = sld [smem:[#allocation3 + $0x202]]  ;;  %v225_v36 = vmul.f32 %v224_v31, %v741_v14 }
  0x3a   :  { %v218_v35 = vadd.f32 %v217_v24, %v214_v27  ;;  %s509_s17 = sld [smem:[#allocation3 + $0x203]]  ;;  %v232_v38 = vstv %s809_s1  ;;  %v229_v41 = vmul.f32 %v228_v32, %v754_v21 }
  0x3b   :  { %v200_v37 = vadd.f32 %v199_v23, %v196_v30  ;;  %s827_s18 = sld [smem:[#allocation3 + $0x204]]  ;;  %v236_v45 = vstv %s813_s14  ;;  %v233_v48 = vmul.f32 %v232_v38, %v767_v33 }
  0x3c   :  { %v222_v40 = vadd.f32 %v221_v28, %v218_v35  ;;  %s830_s0 = sld [smem:[#allocation3 + $0x205]]  ;;  %v237_v54 = vmul.f32 %v236_v45, %v784_v44  ;;  %v240_v63 = vstv %s817_s30 }
  0x3d   :  { %v203_v43 = vadd.f32 %v202_v34, %v200_v37  ;;  %v247_v46 = vstv %s506_s15  ;;  %s833_s2 = sld [smem:[#allocation3 + $0x206]] }
  0x3e   :  { %v226_v47 = vadd.f32 %v225_v36, %v222_v40  ;;  %v248_v49 = vmul.f32 %v247_v46, %v709_v0  ;;  %v250_v50 = vstv %s507_s3  ;;  %s837_s19 = sld [smem:[#allocation3 + $0x207]]  ;;  %v561_v19 = vpop.eup %560 }
  0x3f   :  { %v251_v51 = vmul.f32 %v250_v50, %v714_v1  ;;  %v254_v52 = vstv %s508_s16  ;;  %s840_s20 = sld [smem:[#allocation5 + $0x4]]  ;;  %v204_v57 = vmul.f32 0.5, %v203_v43  ;;  %v168_v30 = vmul.f32 0.5, %v561_v19 }
  0x40   :  { %v230_v53 = vadd.f32 %v229_v41, %v226_v47  ;;  %v255_v55 = vmul.f32 %v254_v52, %v721_v2  ;;  %v258_v56 = vstv %s509_s17  ;;  %s515_s21 = sld [smem:[#allocation3 + $0x280]] }
  0x41   :  { %v252_v58 = vadd.f32 %v251_v51, %v248_v49  ;;  %v259_v59 = vmul.f32 %v258_v56, %v734_v8  ;;  %s516_s22 = sld [smem:[#allocation3 + $0x281]]  ;;  %v262_v61 = vstv %s827_s18  ;;  %562 = vtanh.f32 %v204_v57 }
  0x42   :  { %v234_v60 = vadd.f32 %v233_v48, %v230_v53  ;;  %v266_v62 = vstv %s830_s0  ;;  %s517_s4 = sld [smem:[#allocation3 + $0x282]]  ;;  %v263_v4 = vmul.f32 %v262_v61, %v741_v14  ;;  %v891_v42 = vadd.f32 0.5, %v168_v30 }
  0x43   :  { %v256_v3 = vadd.f32 %v255_v55, %v252_v58  ;;  %s849_s23 = sld [smem:[#allocation3 + $0x283]]  ;;  %v270_v6 = vstv %s833_s2  ;;  %v267_v9 = vmul.f32 %v266_v62, %v754_v21 }
  0x44   :  { %v238_v5 = vadd.f32 %v237_v54, %v234_v60  ;;  %s852_s24 = sld [smem:[#allocation3 + $0x284]]  ;;  %v274_v11 = vstv %s837_s19  ;;  %v271_v16 = vmul.f32 %v270_v6, %v767_v33 }
  0x45   :  { %v260_v7 = vadd.f32 %v259_v59, %v256_v3  ;;  %s855_s25 = sld [smem:[#allocation3 + $0x285]]  ;;  %v275_v25 = vmul.f32 %v274_v11, %v784_v44 }
  0x46   :  { %v241_v10 = vadd.f32 %v240_v63, %v238_v5  ;;  %v285_v12 = vstv %s515_s21  ;;  %s858_s26 = sld [smem:[#allocation3 + $0x286]] }
  0x47   :  { %v264_v15 = vadd.f32 %v263_v4, %v260_v7  ;;  %v286_v17 = vmul.f32 %v285_v12, %v709_v0  ;;  %v288_v18 = vstv %s516_s22  ;;  %s862_s27 = sld [smem:[#allocation3 + $0x287]]  ;;  %v130_v0 = vmul.f32 0.5, %v559_v13  ;;  %v563_v29 = vpop.eup %562 }
  0x48   :  { %v242_v20 = vmul.f32 0.5, %v241_v10  ;;  %v289_v22 = vmul.f32 %v288_v18, %v714_v1  ;;  %v292_v23 = vstv %s517_s4  ;;  %s865_s28 = sld [smem:[#allocation5 + $0x5]]  ;;  %v206_v39 = vmul.f32 0.5, %v563_v29 }
  0x49   :  { %v268_v24 = vadd.f32 %v267_v9, %v264_v15  ;;  %v293_v26 = vmul.f32 %v292_v23, %v721_v2  ;;  %v296_v27 = vstv %s849_s23  ;;  %s870_s8 = sld [smem:[#allocation7]]  ;;  %v278_v2 = vstv %s840_s20 }
  0x4a   :  { %564 = vtanh.f32 %v242_v20  ;;  %v290_v28 = vadd.f32 %v289_v22, %v286_v17  ;;  %v297_v1 = vmul.f32 %v296_v27, %v734_v8  ;;  %s873_s29 = sld [smem:[#allocation7 + $0x1]]  ;;  %v300_v32 = vstv %s852_s24 }
  0x4b   :  { %v272_v31 = vadd.f32 %v271_v16, %v268_v24  ;;  %v304_v34 = vstv %s855_s25  ;;  %s877_s6 = sld [smem:[#allocation7 + $0x2]]  ;;  %v301_v36 = vmul.f32 %v300_v32, %v741_v14  ;;  %v886_v38 = vadd.f32 0.5, %v130_v0 }
  0x4c   :  { %v294_v35 = vadd.f32 %v293_v26, %v290_v28  ;;  %s881_s9 = sld [smem:[#allocation7 + $0x3]]  ;;  %v308_v8 = vstv %s858_s26  ;;  %v305_v41 = vmul.f32 %v304_v34, %v754_v21  ;;  %v899_v21 = vadd.f32 0.5, %v206_v39 }
  0x4d   :  { %v276_v37 = vadd.f32 %v275_v25, %v272_v31  ;;  %s884_s10 = sld [smem:[#allocation7 + $0x4]]  ;;  %v312_v45 = vstv %s862_s27  ;;  %v309_v48 = vmul.f32 %v308_v8, %v767_v33 }
  0x4e   :  { %v298_v40 = vadd.f32 %v297_v1, %v294_v35  ;;  %s889_s11 = sld [smem:[#allocation7 + $0x5]]  ;;  %v313_v52 = vmul.f32 %v312_v45, %v784_v44  ;;  %v316_v57 = vstv %s865_s28 }
  0x4f   :  { %v279_v43 = vadd.f32 %v278_v2, %v276_v37  ;;  %v323_v14 = vstv %s870_s8  ;;  %s895_s12 = sld [smem:[#allocation8]] }
  0x50   :  { %v565_v46 = vpop.eup %564  ;;  %v302_v47 = vadd.f32 %v301_v36, %v298_v40  ;;  %v326_v49 = vstv %s873_s29  ;;  %s529_s13 = sld [smem:[#allocation7 + $0x80]]  ;;  %v324_v53 = vmul.f32 %v323_v14, %v886_v38 }
  0x51   :  { %v280_v50 = vmul.f32 0.5, %v279_v43  ;;  %s530_s1 = sld [smem:[#allocation7 + $0x81]]  ;;  %v244_v54 = vmul.f32 0.5, %v565_v46  ;;  %v327_v55 = vmul.f32 %v326_v49, %v891_v42  ;;  %v330_v56 = vstv %s877_s6 }
  0x52   :  { %v306_v51 = vadd.f32 %v305_v41, %v302_v47  ;;  %s531_s14 = sld [smem:[#allocation7 + $0x82]]  ;;  %v331_v44 = vmul.f32 %v330_v56, %v899_v21  ;;  %v334_v4 = vstv %s881_s9 }
  0x53   :  { %566 = vtanh.f32 %v280_v50  ;;  %s905_s30 = sld [smem:[#allocation7 + $0x83]]  ;;  %v915_v60 = vadd.f32 0.5, %v244_v54  ;;  %v328_v61 = vadd.f32 %v327_v55, %v324_v53  ;;  %v338_v18 = vstv %s884_s10 }
  0x54   :  { %v310_v33 = vadd.f32 %v309_v48, %v306_v51  ;;  %s907_s15 = sld [smem:[#allocation7 + $0x84]]  ;;  %v342_v2 = vstv %s889_s11 }
  0x55   :  { %s910_s3 = sld [smem:[#allocation7 + $0x85]]  ;;  %v332_v15 = vadd.f32 %v331_v44, %v328_v61  ;;  %v335_v16 = vmul.f32 %v334_v4, %v915_v60  ;;  %v346_v39 = vstv %s895_s12 }
  0x56   :  { %v314_v58 = vadd.f32 %v313_v52, %v310_v33  ;;  %v353_v59 = vstv %s529_s13  ;;  %s913_s16 = sld [smem:[#allocation8 + $0x1]] }
  0x57   :  { %v354_v62 = vmul.f32 %v353_v59, %v886_v38  ;;  %v356_v63 = vstv %s530_s1  ;;  %s536_s17 = sld [smem:[#allocation7 + $0x100]]  ;;  %v336_v25 = vadd.f32 %v335_v16, %v332_v15 }
  0x58   :  { %v317_v3 = vadd.f32 %v316_v57, %v314_v58  ;;  %v357_v5 = vmul.f32 %v356_v63, %v891_v42  ;;  %v360_v6 = vstv %s531_s14  ;;  %s537_s18 = sld [smem:[#allocation7 + $0x101]] }
  0x59   :  { %v567_v7 = vpop.eup %566  ;;  %v361_v9 = vmul.f32 %v360_v6, %v899_v21  ;;  %s538_s0 = sld [smem:[#allocation7 + $0x102]]  ;;  %v364_v13 = vstv %s905_s30 }
  0x5a   :  { %v282_v10 = vmul.f32 0.5, %v567_v7  ;;  %v318_v11 = vmul.f32 0.5, %v317_v3  ;;  %v358_v12 = vadd.f32 %v357_v5, %v354_v62  ;;  %s922_s2 = sld [smem:[#allocation7 + $0x103]]  ;;  %v365_v20 = vmul.f32 %v364_v13, %v915_v60 }
  0x5b   :  { %s925_s19 = sld [smem:[#allocation7 + $0x104]]  ;;  %v368_v23 = vstv %s907_s15  ;;  %v372_v40 = vstv %s910_s3 }
  0x5c   :  { %v283_v17 = vadd.f32 0.5, %v282_v10  ;;  %568 = vtanh.f32 %v318_v11  ;;  %s928_s20 = sld [smem:[#allocation7 + $0x105]]  ;;  %v362_v19 = vadd.f32 %v361_v9, %v358_v12  ;;  %v376_v50 = vstv %s913_s16 }
  0x5d   :  { %v383_v22 = vstv %s536_s17  ;;  %s931_s21 = sld [smem:[#allocation8 + $0x2]] }
  0x5e   :  { %v384_v24 = vmul.f32 %v383_v22, %v886_v38  ;;  %s543_s22 = sld [smem:[#allocation7 + $0x180]]  ;;  %v339_v26 = vmul.f32 %v338_v18, %v283_v17  ;;  %v386_v27 = vstv %s537_s18  ;;  %v366_v29 = vadd.f32 %v365_v20, %v362_v19 }
  0x5f   :  { %v390_v0 = vstv %s538_s0  ;;  %s544_s4 = sld [smem:[#allocation7 + $0x181]]  ;;  %v387_v28 = vmul.f32 %v386_v27, %v891_v42  ;;  %v369_v30 = vmul.f32 %v368_v23, %v283_v17 }
  0x60   :  { %v391_v1 = vmul.f32 %v390_v0, %v899_v21  ;;  %s937_s23 = sld [smem:[#allocation7 + $0x182]]  ;;  %v394_v31 = vstv %s922_s2  ;;  %v340_v8 = vadd.f32 %v339_v26, %v336_v25 }
  0x61   :  { %v398_v32 = vstv %s925_s19  ;;  %s941_s24 = sld [smem:[#allocation7 + $0x183]]  ;;  %v388_v35 = vadd.f32 %v387_v28, %v384_v24  ;;  %v395_v36 = vmul.f32 %v394_v31, %v915_v60  ;;  %v370_v47 = vadd.f32 %v369_v30, %v366_v29 }
  0x62   :  { %v569_v34 = vpop.eup %568  ;;  %s945_s25 = sld [smem:[#allocation7 + $0x184]]  ;;  %v399_v43 = vmul.f32 %v398_v32, %v283_v17  ;;  %v402_v45 = vstv %s928_s20 }
  0x63   :  { %v320_v37 = vmul.f32 0.5, %v569_v34  ;;  %s949_s26 = sld [smem:[#allocation7 + $0x185]]  ;;  %v392_v41 = vadd.f32 %v391_v1, %v388_v35  ;;  %v406_v62 = vstv %s931_s21 }
  0x64   :  { %v413_v14 = vstv %s543_s22  ;;  %s549_s27 = sld [smem:[#allocation8 + $0x3]] }
  0x65   :  { %v321_v46 = vadd.f32 0.5, %v320_v37  ;;  %v414_v48 = vmul.f32 %v413_v14, %v886_v38  ;;  %v416_v49 = vstv %s544_s4  ;;  %v396_v51 = vadd.f32 %v395_v36, %v392_v41  ;;  %s442_s28 = sld [smem:[#allocation10]] }
  0x66   :  { %v417_v52 = vmul.f32 %v416_v49, %v891_v42  ;;  %v420_v53 = vstv %s937_s23  ;;  %s550_s8 = sld [smem:[#allocation10 + $0x1]] }
  0x67   :  { %v343_v54 = vmul.f32 %v342_v2, %v321_v46  ;;  %v373_v55 = vmul.f32 %v372_v40, %v321_v46  ;;  %v403_v56 = vmul.f32 %v402_v45, %v321_v46  ;;  %v421_v33 = vmul.f32 %v420_v53, %v899_v21  ;;  %s551_s29 = sld [smem:[#allocation10 + $0x2]] }
  0x68   :  { %v400_v57 = vadd.f32 %v399_v43, %v396_v51  ;;  %v418_v58 = vadd.f32 %v417_v52, %v414_v48  ;;  %v424_v44 = vstv %s941_s24  ;;  %v428_v59 = vstv %s945_s25  ;;  %s552_s6 = sld [smem:[#allocation10 + $0x3]] }
  0x69   :  { %v344_v61 = vadd.f32 %v343_v54, %v340_v8  ;;  %v374_v38 = vadd.f32 %v373_v55, %v370_v47  ;;  %v425_v63 = vmul.f32 %v424_v44, %v915_v60  ;;  %v429_v42 = vmul.f32 %v428_v59, %v283_v17 }
  0x6a   :  { %v404_v3 = vadd.f32 %v403_v56, %v400_v57  ;;  %v422_v4 = vadd.f32 %v421_v33, %v418_v58  ;;  %v432_v5 = vstv %s949_s26  ;;  %v436_v16 = vstv %s549_s27 }
  0x6b   :  { %v347_v6 = vadd.f32 %v346_v39, %v344_v61  ;;  %v377_v7 = vadd.f32 %v376_v50, %v374_v38  ;;  %v433_v11 = vmul.f32 %v432_v5, %v321_v46  ;;  %v443_v25 = vstv %s442_s28 }
  0x6c   :  { %v407_v9 = vadd.f32 %v406_v62, %v404_v3  ;;  %v426_v10 = vadd.f32 %v425_v63, %v422_v4  ;;  %v446_v0 = vstv %s550_s8  ;;  %v458_v40 = vstv %s973_s5 }
  0x6d   :  { %v348_v21 = vmul.f32 0.5, %v347_v6  ;;  %v378_v12 = vmul.f32 0.5, %v377_v7  ;;  %v450_v1 = vstv %s551_s29 }
  0x6e   :  { %v408_v13 = vmul.f32 0.5, %v407_v9  ;;  %v430_v15 = vadd.f32 %v429_v42, %v426_v10  ;;  %v454_v36 = vstv %s552_s6 }
  0x6f   :  { %570 = vtanh.f32 %v348_v21 }
  0x70   :  { %572 = vtanh.f32 %v378_v12  ;;  %v434_v18 = vadd.f32 %v433_v11, %v430_v15 }
  0x71   :  { %574 = vtanh.f32 %v408_v13 }
  0x72   :  { %v437_v60 = vadd.f32 %v436_v16, %v434_v18 }
  0x74   :  { %v438_v17 = vmul.f32 0.5, %v437_v60 }
  0x75   :  { %v571_v19 = vpop.eup %570 }
  0x76   :  { %v573_v20 = vpop.eup %572  ;;  %v350_v22 = vmul.f32 0.5, %v571_v19  ;;  %576 = vtanh.f32 %v438_v17 }
  0x77   :  { %v575_v23 = vpop.eup %574  ;;  %v380_v24 = vmul.f32 0.5, %v573_v20 }
  0x78   :  { %v351_v26 = vadd.f32 0.5, %v350_v22  ;;  %v410_v27 = vmul.f32 0.5, %v575_v23 }
  0x79   :  { %v381_v28 = vadd.f32 0.5, %v380_v24 }
  0x7a   :  { %v411_v29 = vadd.f32 0.5, %v410_v27  ;;  %v444_v30 = vmul.f32 %v443_v25, %v351_v26 }
  0x7b   :  { %v447_v31 = vmul.f32 %v446_v0, %v381_v28 }
  0x7c   :  { %v577_v32 = vpop.eup %576  ;;  %v451_v34 = vmul.f32 %v450_v1, %v411_v29 }
  0x7d   :  { %v440_v2 = vmul.f32 0.5, %v577_v32  ;;  %v448_v35 = vadd.f32 %v447_v31, %v444_v30 }
  0x7f   :  { %v441_v37 = vadd.f32 0.5, %v440_v2  ;;  %v452_v8 = vadd.f32 %v451_v34, %v448_v35 }
  0x81   :  { %v455_v39 = vmul.f32 %v454_v36, %v441_v37 }
  0x83   :  { %v456_v41 = vadd.f32 %v455_v39, %v452_v8 }
  0x85   :  { %v459_v43 = vadd.f32 %v458_v40, %v456_v41 }
  0x87   :  { %v460_v45 = vmul.f32 0.5, %v459_v43 }
  0x89   :  { %578 = vtanh.f32 %v460_v45 }
  0x8f   :  { %v579_v14 = vpop.eup %578 }
  0x90   :  { %v462_v46 = vmul.f32 0.5, %v579_v14 }
  0x92   :  { %v463_v47 = vadd.f32 0.5, %v462_v46 }
  0x94   :  { %464 = vst [vmem:[%s975_s7] sm:$0x1] %v463_v47 }
  0x95   :  { %469 = vsyncpa [#allocation4], 1 }
  0x96   :  { %470 = vsyncpa [#allocation6], 1 }
  0x97   :  { %471 = vsyncpa [#allocation9], 1 }

</bundles_post_ra>
